<compile_context>
chip_gen: v5e
topology: v5e:2x2
jax: 0.10.0
libtpu: 0.0.40
codegen_flags: <defaults>
</compile_context>

<pallas_src>
import functools

import jax
import jax.numpy as jnp
from jax.experimental import pallas as pl
from jax.experimental.pallas import tpu as pltpu

block_size = 10    # max sequence length (positional table size in the module)
n_embd     = 10    # embedding dim
LN_EPS     = 1e-5  # torch.nn.LayerNorm default eps
LANE       = 128   # TPU vreg lane width


def _round_up(x, m):
    return ((x + m - 1) // m) * m


def _pad2d(x, rows, cols):
    r, c = x.shape
    return jnp.pad(x, ((0, rows - r), (0, cols - c)))


def gpt_head_kernel(ids_ref, table_ref, gamma_ref, beta_ref, w_ref, b_ref, out_ref,
                    *, true_c):
    """Fused: x = tok_embed + pos_embed ; x = LayerNorm(x) ; logits = x @ W + b.

    ids_ref   : (BT, 2)   int32   [token_id, position_id] per row
    table_ref : (Vp, Cp)  f32     zero-padded token-embedding table
    gamma_ref : (1, Cp)   f32     zero-padded LN weight
    beta_ref  : (1, Cp)   f32     zero-padded LN bias
    w_ref     : (Cp, Vp)  f32     zero-padded lm_head weight (in, out)
    b_ref     : (1, Vp)   f32     zero-padded lm_head bias
    out_ref   : (BT, Vp)  f32     lane-dense logits (padded cols sliced in wrapper)
    """
    BT = ids_ref.shape[0]
    Vp = table_ref.shape[0]
    Cp = table_ref.shape[1]

    ids = ids_ref[...]                                   # (BT, 2) int32
    tok_id = ids[:, 0:1]                                 # (BT, 1)
    pos_id = ids[:, 1:2]                                 # (BT, 1)

    # Combined one-hot gather (token + position, same table) on the MXU.
    lane_v = jax.lax.broadcasted_iota(jnp.int32, (BT, Vp), 1)
    onehot = ((lane_v == tok_id).astype(jnp.float32)
              + (lane_v == pos_id).astype(jnp.float32))  # (BT, Vp)
    x = jnp.dot(onehot, table_ref[...],
                preferred_element_type=jnp.float32)       # (BT, Cp), padded cols = 0

    # LayerNorm over the true embedding width (biased variance, divisor = true_c).
    col = jax.lax.broadcasted_iota(jnp.int32, (BT, Cp), 1)
    valid = (col < true_c).astype(jnp.float32)           # mask padded lanes
    inv_c = jnp.float32(1.0 / true_c)
    mean = jnp.sum(x, axis=-1, keepdims=True) * inv_c    # padded cols are zero
    xc = (x - mean) * valid                              # keep padded lanes at 0
    var = jnp.sum(xc * xc, axis=-1, keepdims=True) * inv_c
    xn = xc * jax.lax.rsqrt(var + LN_EPS)
    xn = xn * gamma_ref[...] + beta_ref[...]             # (1,Cp) sublane-broadcast

    # lm_head: single 2D MXU matmul, lane-dense unmasked store.
    logits = jnp.dot(xn, w_ref[...], preferred_element_type=jnp.float32)
    out_ref[...] = logits + b_ref[...]


def gpt_forward(index, params):
    """Forward pass matching GPTLanguageModel.forward(index)."""
    tok_table = params["token_embeddings"]               # (V, C)
    ln_gamma  = params["ln_gamma"]                        # (C,)
    ln_beta   = params["ln_beta"]                         # (C,)
    lm_w      = params["lm_head_w"]                       # (C, V) (transposed torch weight)
    lm_b      = params["lm_head_b"]                       # (V,)

    B, T = index.shape
    V, C = tok_table.shape
    BT = B * T
    Cp = _round_up(max(C, LANE), LANE)
    Vp = _round_up(max(V, LANE), LANE)

    # Zero-pad parameters to lane-dense shapes (zeros contribute nothing to sums
    # or matmuls; LN divisor stays the true C inside the kernel).
    table_p = _pad2d(tok_table, Vp, Cp)                   # (Vp, Cp)
    gamma_p = _pad2d(ln_gamma.reshape(1, C), 1, Cp)       # (1, Cp)
    beta_p  = _pad2d(ln_beta.reshape(1, C), 1, Cp)        # (1, Cp)
    w_p     = _pad2d(lm_w, Cp, Vp)                        # (Cp, Vp)
    b_p     = _pad2d(lm_b.reshape(1, V), 1, Vp)           # (1, Vp)

    # Tiny id array; the gather itself happens inside the kernel.
    tok_ids = index.reshape(BT, 1).astype(jnp.int32)
    pos_ids = jnp.tile(jnp.arange(T, dtype=jnp.int32), B).reshape(BT, 1)
    ids = jnp.concatenate([tok_ids, pos_ids], axis=1)     # (BT, 2)

    vmem = pltpu.MemorySpace.VMEM
    kernel = functools.partial(gpt_head_kernel, true_c=C)
    out = pl.pallas_call(
        kernel,
        out_shape=jax.ShapeDtypeStruct((BT, Vp), jnp.float32),
        in_specs=[
            pl.BlockSpec(memory_space=vmem),   # ids
            pl.BlockSpec(memory_space=vmem),   # padded token table
            pl.BlockSpec(memory_space=vmem),   # ln gamma (1, Cp)
            pl.BlockSpec(memory_space=vmem),   # ln beta  (1, Cp)
            pl.BlockSpec(memory_space=vmem),   # lm_head weight (Cp, Vp)
            pl.BlockSpec(memory_space=vmem),   # lm_head bias   (1, Vp)
        ],
        out_specs=pl.BlockSpec(memory_space=vmem),
    )(ids, table_p, gamma_p, beta_p, w_p, b_p)

    return out[:, :V].reshape(B, T, V)


def init_params(key, vocab_size):
    """Deterministic init mirroring _init_weights: N(0, 0.02) embeddings/linear,
    zero linear bias, LayerNorm weight=1 / bias=0 (torch default)."""
    k_tok, k_lin = jax.random.split(key)
    return {
        "token_embeddings": 0.02 * jax.random.normal(
            k_tok, (vocab_size, n_embd), dtype=jnp.float32),
        "ln_gamma": jnp.ones((n_embd,), jnp.float32),
        "ln_beta": jnp.zeros((n_embd,), jnp.float32),
        # torch Linear weight is (out, in); store transposed (in, out) for x @ W
        "lm_head_w": 0.02 * jax.random.normal(
            k_lin, (n_embd, vocab_size), dtype=jnp.float32),
        "lm_head_b": jnp.zeros((vocab_size,), jnp.float32),
    }


def reference_forward(index, params):
    """Pure-JAX reference (exactly mirrors the PyTorch module, including the
    intentional reuse of the token table for positional embeddings)."""
    tok_table = params["token_embeddings"]
    B, T = index.shape
    x = tok_table[index] + tok_table[jnp.arange(T)][None, :, :]
    mean = jnp.mean(x, axis=-1, keepdims=True)
    var = jnp.mean((x - mean) ** 2, axis=-1, keepdims=True)
    xn = (x - mean) / jnp.sqrt(var + LN_EPS)
    xn = xn * params["ln_gamma"] + params["ln_beta"]
    return xn @ params["lm_head_w"] + params["lm_head_b"]


if __name__ == "__main__":
    key = jax.random.PRNGKey(0)
    k_param, k_idx = jax.random.split(key)

    vocab_size = 32      # synthetic len(chars)
    B, T = 2, 8          # T <= block_size

    params = init_params(k_param, vocab_size)
    index = jax.random.randint(k_idx, (B, T), 0, vocab_size, dtype=jnp.int32)

    logits = gpt_forward(index, params)
    logits = jax.block_until_ready(logits)

    ref = reference_forward(index, params)
    assert logits.shape == (B, T, vocab_size)
    assert jnp.allclose(logits, ref, atol=1e-5, rtol=1e-5), "mismatch vs reference"

    print("KERNEL_OK")
</pallas_src>

<mosaic_0001>
module attributes {stable_mosaic.version = 11 : i64} {
  func.func @gpt_head_kernel(%arg0: memref<16x2xi32, #tpu.memory_space<vmem>>, %arg1: memref<128x128xf32, #tpu.memory_space<vmem>>, %arg2: memref<1x128xf32, #tpu.memory_space<vmem>>, %arg3: memref<1x128xf32, #tpu.memory_space<vmem>>, %arg4: memref<128x128xf32, #tpu.memory_space<vmem>>, %arg5: memref<1x128xf32, #tpu.memory_space<vmem>>, %arg6: memref<16x128xf32, #tpu.memory_space<vmem>>) attributes {dimension_semantics = [], scalar_prefetch = 0 : i64, scratch_operands = 0 : i64, tpu.core_type = #tpu.core_type<tc>} {
    %c0 = arith.constant 0 : index
    %c0_0 = arith.constant 0 : index
    %0 = vector.load %arg0[%c0, %c0_0] : memref<16x2xi32, #tpu.memory_space<vmem>>, vector<16x2xi32>
    %1 = vector.extract_strided_slice %0 {offsets = [0, 0], sizes = [16, 1], strides = [1, 1]} : vector<16x2xi32> to vector<16x1xi32>
    %2 = vector.extract_strided_slice %0 {offsets = [0, 1], sizes = [16, 1], strides = [1, 1]} : vector<16x2xi32> to vector<16x1xi32>
    %3 = tpu.iota {dimensions = array<i32: 1>} : vector<16x128xi32>
    %4 = vector.broadcast %1 : vector<16x1xi32> to vector<16x128xi32>
    %5 = arith.cmpi eq, %3, %4 : vector<16x128xi32>
    %6 = arith.extui %5 : vector<16x128xi1> to vector<16x128xi32>
    %7 = arith.sitofp %6 : vector<16x128xi32> to vector<16x128xf32>
    %8 = vector.broadcast %2 : vector<16x1xi32> to vector<16x128xi32>
    %9 = arith.cmpi eq, %3, %8 : vector<16x128xi32>
    %10 = arith.extui %9 : vector<16x128xi1> to vector<16x128xi32>
    %11 = arith.sitofp %10 : vector<16x128xi32> to vector<16x128xf32>
    %12 = arith.addf %7, %11 : vector<16x128xf32>
    %c0_1 = arith.constant 0 : index
    %c0_2 = arith.constant 0 : index
    %13 = vector.load %arg1[%c0_1, %c0_2] : memref<128x128xf32, #tpu.memory_space<vmem>>, vector<128x128xf32>
    %cst = arith.constant dense<0.000000e+00> : vector<16x128xf32>
    %14 = tpu.matmul %12, %13, %cst {dimension_numbers = #tpu.dot_dimension_numbers<[1], [0], [0], [1], [0, 0, 1, 1], [], []>} : vector<16x128xf32>, vector<128x128xf32>, vector<16x128xf32> -> vector<16x128xf32>
    %15 = tpu.iota {dimensions = array<i32: 1>} : vector<16x128xi32>
    %c10_i32 = arith.constant 10 : i32
    %16 = vector.broadcast %c10_i32 : i32 to vector<16x128xi32>
    %17 = arith.cmpi slt, %15, %16 : vector<16x128xi32>
    %18 = arith.extui %17 : vector<16x128xi1> to vector<16x128xi32>
    %19 = arith.sitofp %18 : vector<16x128xi32> to vector<16x128xf32>
    %cst_3 = arith.constant dense<0.000000e+00> : vector<16xf32>
    %20 = vector.multi_reduction <add>, %14, %cst_3 [1] : vector<16x128xf32> to vector<16xf32>
    %21 = vector.shape_cast %20 : vector<16xf32> to vector<16x1xf32>
    %cst_4 = arith.constant 1.000000e-01 : f32
    %22 = vector.broadcast %cst_4 : f32 to vector<16x1xf32>
    %23 = arith.mulf %21, %22 : vector<16x1xf32>
    %24 = vector.broadcast %23 : vector<16x1xf32> to vector<16x128xf32>
    %25 = arith.subf %14, %24 : vector<16x128xf32>
    %26 = arith.mulf %25, %19 : vector<16x128xf32>
    %27 = arith.mulf %26, %26 : vector<16x128xf32>
    %cst_5 = arith.constant dense<0.000000e+00> : vector<16xf32>
    %28 = vector.multi_reduction <add>, %27, %cst_5 [1] : vector<16x128xf32> to vector<16xf32>
    %29 = vector.shape_cast %28 : vector<16xf32> to vector<16x1xf32>
    %cst_6 = arith.constant 1.000000e-01 : f32
    %30 = vector.broadcast %cst_6 : f32 to vector<16x1xf32>
    %31 = arith.mulf %29, %30 : vector<16x1xf32>
    %cst_7 = arith.constant 9.99999974E-6 : f32
    %32 = vector.broadcast %cst_7 : f32 to vector<16x1xf32>
    %33 = arith.addf %31, %32 : vector<16x1xf32>
    %34 = math.rsqrt %33 : vector<16x1xf32>
    %35 = vector.broadcast %34 : vector<16x1xf32> to vector<16x128xf32>
    %36 = arith.mulf %26, %35 : vector<16x128xf32>
    %c0_8 = arith.constant 0 : index
    %c0_9 = arith.constant 0 : index
    %37 = vector.load %arg2[%c0_8, %c0_9] : memref<1x128xf32, #tpu.memory_space<vmem>>, vector<1x128xf32>
    %38 = vector.broadcast %37 : vector<1x128xf32> to vector<16x128xf32>
    %39 = arith.mulf %36, %38 : vector<16x128xf32>
    %c0_10 = arith.constant 0 : index
    %c0_11 = arith.constant 0 : index
    %40 = vector.load %arg3[%c0_10, %c0_11] : memref<1x128xf32, #tpu.memory_space<vmem>>, vector<1x128xf32>
    %41 = vector.broadcast %40 : vector<1x128xf32> to vector<16x128xf32>
    %42 = arith.addf %39, %41 : vector<16x128xf32>
    %c0_12 = arith.constant 0 : index
    %c0_13 = arith.constant 0 : index
    %43 = vector.load %arg4[%c0_12, %c0_13] : memref<128x128xf32, #tpu.memory_space<vmem>>, vector<128x128xf32>
    %cst_14 = arith.constant dense<0.000000e+00> : vector<16x128xf32>
    %44 = tpu.matmul %42, %43, %cst_14 {dimension_numbers = #tpu.dot_dimension_numbers<[1], [0], [0], [1], [0, 0, 1, 1], [], []>} : vector<16x128xf32>, vector<128x128xf32>, vector<16x128xf32> -> vector<16x128xf32>
    %c0_15 = arith.constant 0 : index
    %c0_16 = arith.constant 0 : index
    %45 = vector.load %arg5[%c0_15, %c0_16] : memref<1x128xf32, #tpu.memory_space<vmem>>, vector<1x128xf32>
    %46 = vector.broadcast %45 : vector<1x128xf32> to vector<16x128xf32>
    %47 = arith.addf %44, %46 : vector<16x128xf32>
    %c0_17 = arith.constant 0 : index
    %c0_18 = arith.constant 0 : index
    %48 = vector.load %arg6[%c0_17, %c0_18] : memref<16x128xf32, #tpu.memory_space<vmem>>, vector<16x128xf32>
    tpu.vector_store %arg6[%c0_17, %c0_18], %47 {strides = array<i32>} : memref<16x128xf32, #tpu.memory_space<vmem>>, vector<16x128xf32>,
    return
  }
}

</mosaic_0001>

<bundles_post_ra>
// kernel: tpu_custom_call.1
= control target key start
LH: loop header
LB: loop body
LE: loop exit
PB: predicated region body
PF: predicated region fallthrough
CT: control target
= control target key end

     0   :  { %11 = vsyncpa [#allocation3], 0  ;;  %s467_s0 = inlined_call_operand.vmem [shape: s32[16,2], index: 0, kind: input, shape index: {}]   ;;  %s468_s1 = inlined_call_operand.hbm [shape: f32[128,128], index: 1, kind: input, shape index: {}]   ;;  %s469_s2 = inlined_call_operand.vmem [shape: f32[1,128], index: 2, kind: input, shape index: {}]   ;;  %s470_s3 = inlined_call_operand.vmem [shape: f32[1,128], index: 3, kind: input, shape index: {}]   ;;  %s471_s4 = inlined_call_operand.hbm [shape: f32[128,128], index: 4, kind: input, shape index: {}]   ;;  %s472_s5 = inlined_call_operand.vmem [shape: f32[1,128], index: 5, kind: input, shape index: {}]   ;;  %s473_s6 = inlined_call_operand.hbm [shape: f32[16,128], index: 6, kind: output, shape index: {}]  }
   0x1   :  { %12 = vsyncpa [#allocation6], 0 }
   0x2   :  { %13 = vsyncpa [#allocation4], 0  ;;  %s20_s23 = sshll.u32 %s468_s1, 4  ;;  %s381_s24 = smov [#allocation2]   ;;  %s21_s23 = int_to_ptr.hbm [resolvable:$true] %s20_s23 }
   0x3   :  { %s22_s25 = sshll.u32 %s381_s24, 4  ;;  %s37_s28 = sshll.u32 %s471_s4, 4  ;;  %s23_s25 = int_to_ptr.vmem [resolvable:$true] %s22_s25  ;;  %s38_s28 = int_to_ptr.hbm [resolvable:$true] %s37_s28 }
   0x4   :  { %s382_s29 = smov 128   ;;  %s383_s30 = smov 8  }
   0x5   :  { %28 = dma.hbm_to_vmem [thread:$0]  %s21_s23, 2048, %s23_s25, [#allocation3], %s382_s29, %s382_s29, %s383_s30  }
   0x6   :  { %s384_s7 = smov [#allocation5]  }
   0x7   :  { %s39_s8 = sshll.u32 %s384_s7, 4  ;;  %s40_s8 = int_to_ptr.vmem [resolvable:$true] %s39_s8 }
   0x8   :  { %45 = dma.hbm_to_vmem [thread:$0]  %s38_s28, 2048, %s40_s8, [#allocation6], %s382_s29, %s382_s29, %s383_s30  }
   0x9   :  { %375 = dma.done.wait [#allocation3], 2048  }
   0xa   :  { %376 = vsyncadd [#allocation3], 4294965248 }
   0xb   :  { %377 = dma.done.wait [#allocation6], 2048  }
   0xc   :  { %378 = vsyncadd [#allocation6], 4294965248  ;;  %v385_v0 = vmov 0   ;;  %v57_v1 = vld [vmem:[%s467_s0 + $0x8] sm:$0xff]  ;;  %v56_v2 = vld [vmem:[%s467_s0] sm:$0xff]  ;;  %v386_v8 = vmov 1   ;;  %v58_v20 = vlaneseq }
   0xd   :  { %292 = vset.pattern.permute.xlu0 %v385_v0  ;;  %294 = vset.pattern.permute.xlu1 %v385_v0  ;;  %v101_v3 = vld [vmem:[#allocation2 + $0x78] sm:$0xff]  ;;  %v100_v4 = vld [vmem:[#allocation2 + $0x70] sm:$0xff]  ;;  %v99_v5 = vld [vmem:[#allocation2 + $0x68] sm:$0xff]  ;;  %v387_v24 = vmov 0.0   ;;  %s233_s18 = sshll.u32 %s473_s6, 4  ;;  %s234_s18 = int_to_ptr.hbm [resolvable:$true] %s233_s18 }
   0xe   :  { %64 = vperm.xlu0 %292, %v57_v1   ;;  %61 = vperm.xlu1 %294, %v56_v2   ;;  %v98_v6 = vld [vmem:[#allocation2 + $0x60] sm:$0xff]  ;;  %v97_v7 = vld [vmem:[#allocation2 + $0x58] sm:$0xff]  ;;  %v96_v9 = vld [vmem:[#allocation2 + $0x50] sm:$0xff]  ;;  %v59_v23 = vand.u32 127, %v58_v20 }
   0xf   :  { %252 = vmatpush.msra.mxu2 %v101_v3  ;;  %102 = vmatpush.msra.mxu0 %v101_v3  ;;  %v95_v10 = vld [vmem:[#allocation2 + $0x48] sm:$0xff]  ;;  %v94_v11 = vld [vmem:[#allocation2 + $0x40] sm:$0xff]  ;;  %v93_v12 = vld [vmem:[#allocation2 + $0x38] sm:$0xff] }
  0x10   :  { %v92_v13 = vld [vmem:[#allocation2 + $0x30] sm:$0xff]  ;;  %v91_v14 = vld [vmem:[#allocation2 + $0x28] sm:$0xff]  ;;  %v90_v15 = vld [vmem:[#allocation2 + $0x20] sm:$0xff]  ;;  %vm125_vm4 = vcmp.lt.s32.totalorder %v59_v23, 10 }
  0x11   :  { %253 = vmatpush.msra.mxu2 %v100_v4  ;;  %103 = vmatpush.msra.mxu0 %v100_v4  ;;  %v89_v16 = vld [vmem:[#allocation2 + $0x18] sm:$0xff]  ;;  %v88_v17 = vld [vmem:[#allocation2 + $0x10] sm:$0xff]  ;;  %v87_v18 = vld [vmem:[#allocation2 + $0x8] sm:$0xff]  ;;  %v251_v39 = vsel %vm125_vm4, 1.0, %v387_v24 }
  0x12   :  { %v86_v19 = vld [vmem:[#allocation2] sm:$0xff]  ;;  %v197_v35 = vld [vmem:[#allocation5 + $0x78] sm:$0xff]  ;;  %v196_v36 = vld [vmem:[#allocation5 + $0x70] sm:$0xff] }
  0x13   :  { %254 = vmatpush.msra.mxu2 %v99_v5  ;;  %104 = vmatpush.msra.mxu0 %v99_v5  ;;  %v195_v48 = vld [vmem:[#allocation5 + $0x68] sm:$0xff]  ;;  %v194_v49 = vld [vmem:[#allocation5 + $0x60] sm:$0xff]  ;;  %v193_v50 = vld [vmem:[#allocation5 + $0x58] sm:$0xff] }
  0x14   :  { %268 = vmatpush.msra.mxu3 %v197_v35  ;;  %202 = vmatpush.msra.mxu1 %v197_v35  ;;  %v192_v51 = vld [vmem:[#allocation5 + $0x50] sm:$0xff]  ;;  %v191_v52 = vld [vmem:[#allocation5 + $0x48] sm:$0xff]  ;;  %v190_v53 = vld [vmem:[#allocation5 + $0x40] sm:$0xff] }
  0x15   :  { %255 = vmatpush.msra.mxu2 %v98_v6  ;;  %105 = vmatpush.msra.mxu0 %v98_v6  ;;  %v189_v54 = vld [vmem:[#allocation5 + $0x38] sm:$0xff]  ;;  %v188_v55 = vld [vmem:[#allocation5 + $0x30] sm:$0xff]  ;;  %v187_v56 = vld [vmem:[#allocation5 + $0x28] sm:$0xff] }
  0x16   :  { %293 = vset.pattern.permute.xlu0 %v386_v8  ;;  %295 = vset.pattern.permute.xlu1 %v386_v8  ;;  %v186_v57 = vld [vmem:[#allocation5 + $0x20] sm:$0xff]  ;;  %v185_v58 = vld [vmem:[#allocation5 + $0x18] sm:$0xff]  ;;  %v184_v59 = vld [vmem:[#allocation5 + $0x10] sm:$0xff] }
  0x17   :  { %76 = vperm.xlu0 %293, %v57_v1   ;;  %73 = vperm.xlu1 %295, %v56_v2   ;;  %v183_v60 = vld [vmem:[#allocation5 + $0x8] sm:$0xff]  ;;  %v182_v61 = vld [vmem:[#allocation5] sm:$0xff] }
  0x18   :  { %256 = vmatpush.msra.mxu2 %v97_v7  ;;  %106 = vmatpush.msra.mxu0 %v97_v7 }
  0x19   :  { %269 = vmatpush.msra.mxu3 %v196_v36  ;;  %203 = vmatpush.msra.mxu1 %v196_v36 }
  0x1a   :  { %257 = vmatpush.msra.mxu2 %v96_v9  ;;  %107 = vmatpush.msra.mxu0 %v96_v9 }
  0x1b   :  { %270 = vmatpush.msra.mxu3 %v195_v48  ;;  %204 = vmatpush.msra.mxu1 %v195_v48 }
  0x1c   :  { %258 = vmatpush.msra.mxu2 %v95_v10  ;;  %108 = vmatpush.msra.mxu0 %v95_v10 }
  0x1d   :  { %271 = vmatpush.msra.mxu3 %v194_v49  ;;  %205 = vmatpush.msra.mxu1 %v194_v49 }
  0x1e   :  { %259 = vmatpush.msra.mxu2 %v94_v11  ;;  %109 = vmatpush.msra.mxu0 %v94_v11 }
  0x1f   :  { %272 = vmatpush.msra.mxu3 %v193_v50  ;;  %206 = vmatpush.msra.mxu1 %v193_v50 }
  0x20   :  { %260 = vmatpush.msra.mxu2 %v93_v12  ;;  %110 = vmatpush.msra.mxu0 %v93_v12  ;;  %v296_v12 = vld [vmem:[%s469_s2] ss:$0 sm:$0xff] }
  0x21   :  { %273 = vmatpush.msra.mxu3 %v192_v51  ;;  %207 = vmatpush.msra.mxu1 %v192_v51 }
  0x22   :  { %261 = vmatpush.msra.mxu2 %v92_v13  ;;  %111 = vmatpush.msra.mxu0 %v92_v13 }
  0x23   :  { %274 = vmatpush.msra.mxu3 %v191_v52  ;;  %208 = vmatpush.msra.mxu1 %v191_v52 }
  0x24   :  { %262 = vmatpush.msra.mxu2 %v91_v14  ;;  %112 = vmatpush.msra.mxu0 %v91_v14 }
  0x25   :  { %275 = vmatpush.msra.mxu3 %v190_v53  ;;  %209 = vmatpush.msra.mxu1 %v190_v53 }
  0x26   :  { %263 = vmatpush.msra.mxu2 %v90_v15  ;;  %113 = vmatpush.msra.mxu0 %v90_v15 }
  0x27   :  { %276 = vmatpush.msra.mxu3 %v189_v54  ;;  %210 = vmatpush.msra.mxu1 %v189_v54 }
  0x28   :  { %264 = vmatpush.msra.mxu2 %v89_v16  ;;  %114 = vmatpush.msra.mxu0 %v89_v16  ;;  %v297_v16 = vld [vmem:[%s470_s3] ss:$0 sm:$0xff]  ;;  %s388_s3 = smov [#allocation7]  }
  0x29   :  { %277 = vmatpush.msra.mxu3 %v188_v55  ;;  %211 = vmatpush.msra.mxu1 %v188_v55  ;;  %s231_s15 = sshll.u32 %s388_s3, 4  ;;  %s232_s15 = int_to_ptr.vmem [resolvable:$true] %s231_s15 }
  0x2a   :  { %265 = vmatpush.msra.mxu2 %v88_v17  ;;  %115 = vmatpush.msra.mxu0 %v88_v17 }
  0x2b   :  { %278 = vmatpush.msra.mxu3 %v187_v56  ;;  %212 = vmatpush.msra.mxu1 %v187_v56 }
  0x2c   :  { %266 = vmatpush.msra.mxu2 %v87_v18  ;;  %116 = vmatpush.msra.mxu0 %v87_v18 }
  0x2d   :  { %279 = vmatpush.msra.mxu3 %v186_v57  ;;  %213 = vmatpush.msra.mxu1 %v186_v57 }
  0x2e   :  { %267 = vmatpush.msra.mxu2 %v86_v19  ;;  %117 = vmatpush.msra.mxu0 %v86_v19 }
  0x2f   :  { %280 = vmatpush.msra.mxu3 %v185_v58  ;;  %214 = vmatpush.msra.mxu1 %v185_v58 }
  0x31   :  { %281 = vmatpush.msra.mxu3 %v184_v59  ;;  %215 = vmatpush.msra.mxu1 %v184_v59 }
  0x33   :  { %282 = vmatpush.msra.mxu3 %v183_v60  ;;  %216 = vmatpush.msra.mxu1 %v183_v60 }
  0x35   :  { %283 = vmatpush.msra.mxu3 %v182_v61  ;;  %217 = vmatpush.msra.mxu1 %v182_v61 }
  0x80   :  { %v65_v21 = vpop.permute.xlu0 %64  ;;  %v62_v22 = vpop.permute.xlu1 %61 }
  0x81   :  { %vm66_vm0 = vcmp.eq.s32.totalorder %v59_v23, %v62_v22  ;;  %vm67_vm1 = vcmp.eq.s32.totalorder %v59_v23, %v65_v21 }
  0x82   :  { %v247_v25 = vsel %vm66_vm0, 1.0, %v387_v24  ;;  %v248_v28 = vsel %vm67_vm1, 1.0, %v387_v24 }
  0x89   :  { %v77_v26 = vpop.permute.xlu0 %76  ;;  %v74_v27 = vpop.permute.xlu1 %73 }
  0x8a   :  { %vm79_vm2 = vcmp.eq.s32.totalorder %v59_v23, %v77_v26  ;;  %vm78_vm3 = vcmp.eq.s32.totalorder %v59_v23, %v74_v27  ;;  %v298_v26 = vld [vmem:[%s472_s5] ss:$0 sm:$0xff] }
  0x8b   :  { %v250_v29 = vsel %vm79_vm2, 1.0, %v387_v24  ;;  %v249_v30 = vsel %vm78_vm3, 1.0, %v387_v24 }
  0x8c   :  { %v85_v31 = vadd.f32 %v250_v29, %v248_v28  ;;  %v84_v32 = vadd.f32 %v249_v30, %v247_v25 }
  0x8e   :  { %121 = vmatmul.f32.vlgmr.msra.gmra.mxu2 %v85_v31  ;;  %118 = vmatmul.f32.vlgmr.msra.gmra.mxu0 %v84_v32 }
 0x10b   :  { %v119_v34 = vpop.f32.mrf.mxu0 }
 0x111   :  { %v122_v33 = vpop.f32.mrf.mxu2 }
 0x112   :  { %130 = vadd.xlane.f32.xlu2 %v122_v33 }
 0x11a   :  { %128 = vadd.xlane.f32.xlu2 %v119_v34 }
 0x185   :  { %v131_v37 = vpop.xlane.xlu2 %130 }
 0x186   :  { %v133_v38 = vmul.f32 0.1, %v131_v37 }
 0x188   :  { %v135_v40 = vsub.f32 %v122_v33, %v133_v38 }
 0x18a   :  { %v442_v41 = vmul.f32 %v251_v39, %v135_v40 }
 0x18c   :  { %v139_v42 = vmul.f32 %v442_v41, %v442_v41 }
 0x18d   :  { %v129_v43 = vpop.xlane.xlu2 %128 }
 0x18e   :  { %v132_v44 = vmul.f32 0.1, %v129_v43  ;;  %142 = vadd.xlane.f32.xlu1 %v139_v42 }
 0x190   :  { %v134_v45 = vsub.f32 %v119_v34, %v132_v44 }
 0x192   :  { %v446_v46 = vmul.f32 %v251_v39, %v134_v45 }
 0x194   :  { %v138_v47 = vmul.f32 %v446_v46, %v446_v46 }
 0x196   :  { %140 = vadd.xlane.f32.xlu2 %v138_v47 }
 0x201   :  { %v143_v62 = vpop.xlane.xlu1 %142 }
 0x202   :  { %v145_v63 = vmul.f32 0.1, %v143_v62 }
 0x204   :  { %v147_v0 = vadd.f32 1e-05, %v145_v63 }
 0x206   :  { %299 = vrsqrt.f32 %v147_v0  ;;  %vm164_vm6 = vweird.f32 %v147_v0 }
 0x209   :  { %v141_v1 = vpop.xlane.xlu2 %140 }
 0x20a   :  { %v144_v2 = vmul.f32 0.1, %v141_v1 }
 0x20c   :  { %v300_v3 = vpop.eup %299  ;;  %v146_v4 = vadd.f32 1e-05, %v144_v2 }
 0x20d   :  { %v159_v5 = vmul.f32 %v300_v3, %v147_v0  ;;  %vm165_vm5 = vweird.f32 %v300_v3 }
 0x20e   :  { %301 = vrsqrt.f32 %v146_v4  ;;  %vm166_vm7 = vmor %vm164_vm6, %vm165_vm5  ;;  %vm154_vm9 = vweird.f32 %v146_v4 }
 0x20f   :  { %v160_v6 = vmul.f32 %v300_v3, %v159_v5 }
 0x211   :  { %v161_v7 = vmul.f32 0.5, %v160_v6 }
 0x213   :  { %v162_v8 = vsub.f32 1.5, %v161_v7 }
 0x214   :  { %v302_v9 = vpop.eup %301 }
 0x215   :  { %v163_v10 = vmul.f32 %v300_v3, %v162_v8  ;;  %v149_v11 = vmul.f32 %v302_v9, %v146_v4  ;;  %vm155_vm8 = vweird.f32 %v302_v9 }
 0x216   :  { %vm156_vm10 = vmor %vm154_vm9, %vm155_vm8 }
 0x217   :  { %v150_v13 = vmul.f32 %v302_v9, %v149_v11  ;;  %v167_v14 = vsel %vm166_vm7, %v300_v3, %v163_v10 }
 0x218   :  { %v169_v15 = vmul.f32 %v167_v14, %v442_v41 }
 0x219   :  { %v151_v17 = vmul.f32 0.5, %v150_v13 }
 0x21a   :  { %v175_v18 = vmul.f32 %v296_v12, %v169_v15 }
 0x21b   :  { %v152_v19 = vsub.f32 1.5, %v151_v17 }
 0x21c   :  { %v181_v20 = vadd.f32 %v297_v16, %v175_v18 }
 0x21d   :  { %v153_v21 = vmul.f32 %v302_v9, %v152_v19 }
 0x21e   :  { %221 = vmatmul.f32.vlgmr.msra.gmra.mxu3 %v181_v20 }
 0x21f   :  { %v157_v22 = vsel %vm156_vm10, %v302_v9, %v153_v21 }
 0x220   :  { %v168_v23 = vmul.f32 %v157_v22, %v446_v46 }
 0x222   :  { %v174_v24 = vmul.f32 %v296_v12, %v168_v23 }
 0x224   :  { %v180_v25 = vadd.f32 %v297_v16, %v174_v24 }
 0x226   :  { %218 = vmatmul.f32.vlgmr.msra.gmra.mxu1 %v180_v25 }
 0x2a1   :  { %v222_v27 = vpop.f32.mrf.mxu3 }
 0x2a2   :  { %v223_v28 = vadd.f32 %v298_v26, %v222_v27 }
 0x2a3   :  { %v219_v29 = vpop.f32.mrf.mxu1 }
 0x2a4   :  { %226 = vst [vmem:[#allocation7 + $0x8] sm:$0xff] %v223_v28  ;;  %v220_v30 = vadd.f32 %v298_v26, %v219_v29 }
 0x2a6   :  { %225 = vst [vmem:[#allocation7] sm:$0xff] %v220_v30 }
 0x2a7   :  { %239 = dma.vmem_to_hbm [thread:$0]  %s232_s15, 256, %s234_s18, [#allocation4], %s382_s29, %s382_s29, %s383_s30  }
 0x2a8   :  { %379 = dma.done.wait [#allocation4], 256  }
 0x2a9   :  { %380 = vsyncadd [#allocation4], 4294967040 }
 0x2aa   :  { %244 = vsyncpa [#allocation3], 1 }
 0x2ab   :  { %245 = vsyncpa [#allocation6], 1 }
 0x2ac   :  { %246 = vsyncpa [#allocation4], 1 }

</bundles_post_ra>
